<compile_context>
chip_gen: v7x
topology: tpu7x:2x2x1
jax: 0.10.0
libtpu: 0.0.40
codegen_flags: <defaults>
</compile_context>

<pallas_src>
import functools

import jax
import jax.numpy as jnp
from jax.experimental import pallas as pl
from jax.experimental.pallas import tpu as pltpu


# ---------------------------------------------------------------------------
# Pallas kernel: full CustomClassifiertvd forward pass (4 packed inputs).
# ---------------------------------------------------------------------------
def _tvd_classifier_kernel(x_ref, w_proj_ref, w_cls_ref, b_cls_ref, out_ref,
                           *, F, mean_scale):
    # x:      (B, Kp)    = [img | ext | txt | 1 | 0-pad]
    # w_proj: (Kp, Np)   block weight, biases folded into the "ones" row
    # w_cls:  (F, Ncp)   classifier weight, lane-padded to 128
    # b_cls:  (1, Ncp)   classifier bias,   lane-padded to 128
    x = x_ref[...]

    # --- single fused projection matmul (biases included via ones column) ---
    proj = jnp.dot(x, w_proj_ref[...], preferred_element_type=jnp.float32)  # (B, Np)
    img_f = proj[:, 0 * F:1 * F]
    ext_f = proj[:, 1 * F:2 * F]
    txt_f = proj[:, 2 * F:3 * F]
    et_f = proj[:, 3 * F:4 * F]

    # --- softmax of each head, computed exactly once ---
    def _softmax(z):
        m = jnp.max(z, axis=-1, keepdims=True)
        e = jnp.exp(z - m)
        inv = pl.reciprocal(jnp.sum(e, axis=-1, keepdims=True), approx=False)
        return e * inv

    p_img = _softmax(img_f)
    p_ext = _softmax(ext_f)
    p_txt = _softmax(txt_f)
    p_et = _softmax(et_f)

    # --- TVD scalars kept as (1,1) 2-D tiles ---
    def _tvd(p, q):
        # mean over batch of 0.5 * sum(|p - q|, -1)  ==  (0.5/B) * total sum
        return mean_scale * jnp.sum(jnp.abs(p - q), keepdims=True)  # (1, 1)

    t_ext = _tvd(p_img, p_ext)
    t_txt = _tvd(p_img, p_txt)
    t_et = _tvd(p_img, p_et)

    inv_sum = pl.reciprocal(t_ext + t_txt + t_et, approx=False)     # (1, 1)
    w_ext = t_ext * inv_sum
    w_txt = t_txt * inv_sum
    w_et = t_et * inv_sum

    # Faithful to the PyTorch module: the img_f coefficient is 1 - (sum of
    # weights) which is ~0 up to fp rounding; kept for exact semantics.
    fusion = (img_f * (1.0 - (w_ext + w_txt + w_et))
              + ext_f * w_ext + txt_f * w_txt + et_f * w_et)         # (B, F)

    out_ref[...] = (
        jnp.dot(fusion, w_cls_ref[...], preferred_element_type=jnp.float32)
        + b_cls_ref[...]
    )


# ---------------------------------------------------------------------------
# Wrapper: packs inputs / weights into 4 lane-dense arrays and calls Pallas.
# ---------------------------------------------------------------------------
def custom_classifier_tvd(img, ext, txt, params):
    B = img.shape[0]
    ext = ext.reshape(B, -1)
    txt = txt.reshape(B, -1)
    Di, De, Dt = img.shape[1], ext.shape[1], txt.shape[1]
    F = params["img_fc_w"].shape[0]
    num_classes = params["classifier_w"].shape[0]

    def _pad128(n):
        return ((n + 127) // 128) * 128

    K = Di + De + Dt + 1                 # +1 for the bias (ones) column
    Kp = _pad128(K)
    Np = _pad128(4 * F)
    Ncp = _pad128(num_classes)

    f32 = jnp.float32

    # --- fused, lane-padded input X = [img | ext | txt | 1 | zeros] ---
    x = jnp.concatenate(
        [img.astype(f32), ext.astype(f32), txt.astype(f32),
         jnp.ones((B, 1), f32)], axis=1)
    x = jnp.pad(x, ((0, 0), (0, Kp - K)))

    # --- fused block projection weight (biases folded into the ones row) ---
    r_img = slice(0, Di)
    r_ext = slice(Di, Di + De)
    r_txt = slice(Di + De, Di + De + Dt)
    r_one = Di + De + Dt

    w_et_t = params["ext_txt_fc_w"].T.astype(f32)          # (De + Dt, F)
    w_proj = jnp.zeros((Kp, Np), f32)
    w_proj = w_proj.at[r_img, 0 * F:1 * F].set(params["img_fc_w"].T.astype(f32))
    w_proj = w_proj.at[r_ext, 1 * F:2 * F].set(params["ext_fc_w"].T.astype(f32))
    w_proj = w_proj.at[r_txt, 2 * F:3 * F].set(params["txt_fc_w"].T.astype(f32))
    w_proj = w_proj.at[r_ext, 3 * F:4 * F].set(w_et_t[:De])
    w_proj = w_proj.at[r_txt, 3 * F:4 * F].set(w_et_t[De:])
    w_proj = w_proj.at[r_one, 0 * F:1 * F].set(params["img_fc_b"].astype(f32))
    w_proj = w_proj.at[r_one, 1 * F:2 * F].set(params["ext_fc_b"].astype(f32))
    w_proj = w_proj.at[r_one, 2 * F:3 * F].set(params["txt_fc_b"].astype(f32))
    w_proj = w_proj.at[r_one, 3 * F:4 * F].set(params["ext_txt_fc_b"].astype(f32))

    # --- classifier weight/bias, lane-padded to 128 output columns ---
    w_cls = jnp.zeros((F, Ncp), f32).at[:, :num_classes].set(
        params["classifier_w"].T.astype(f32))
    b_cls = jnp.zeros((1, Ncp), f32).at[:, :num_classes].set(
        params["classifier_b"].astype(f32))

    vmem = pl.BlockSpec(memory_space=pltpu.MemorySpace.VMEM)
    kernel = functools.partial(_tvd_classifier_kernel, F=F, mean_scale=0.5 / B)

    out_padded = pl.pallas_call(
        kernel,
        out_shape=jax.ShapeDtypeStruct((B, Ncp), f32),
        in_specs=[vmem, vmem, vmem, vmem],
        out_specs=vmem,
    )(x, w_proj, w_cls, b_cls)

    return out_padded[:, :num_classes]


# ---------------------------------------------------------------------------
# Pure-JAX reference (mirrors the PyTorch module exactly)
# ---------------------------------------------------------------------------
def _reference(img, ext, txt, params):
    B = img.shape[0]
    ext = ext.reshape(B, -1)
    txt = txt.reshape(B, -1)

    def lin(x, w, b):
        return x @ w.T + b

    img_f = lin(img, params["img_fc_w"], params["img_fc_b"])
    ext_f = lin(ext, params["ext_fc_w"], params["ext_fc_b"])
    txt_f = lin(txt, params["txt_fc_w"], params["txt_fc_b"])
    ext_txt_f = lin(jnp.concatenate([ext, txt], -1),
                    params["ext_txt_fc_w"], params["ext_txt_fc_b"])

    def tvd(p, q):
        pp = jax.nn.softmax(p, -1)
        qq = jax.nn.softmax(q, -1)
        return jnp.mean(0.5 * jnp.sum(jnp.abs(pp - qq), -1))

    t1, t2, t3 = tvd(img_f, ext_f), tvd(img_f, txt_f), tvd(img_f, ext_txt_f)
    s = t1 + t2 + t3
    w1, w2, w3 = t1 / s, t2 / s, t3 / s
    fusion = (img_f * (1.0 - (w1 + w2 + w3))
              + ext_f * w1 + txt_f * w2 + ext_txt_f * w3)
    return lin(fusion, params["classifier_w"], params["classifier_b"])


if __name__ == "__main__":
    # Small shapes consistent with the module's forward
    B = 4
    img_feature_dim = 32
    ext_feature_dim = 16        # ext input given as (B, 4, 4) and flattened
    txt_feature_dim = 24
    fusion_dim = 32
    num_classes = 2

    key = jax.random.PRNGKey(0)
    ks = jax.random.split(key, 16)

    def init_linear(kw, kb, out_dim, in_dim):
        bound = 1.0 / jnp.sqrt(in_dim)
        w = jax.random.uniform(kw, (out_dim, in_dim), jnp.float32, -bound, bound)
        b = jax.random.uniform(kb, (out_dim,), jnp.float32, -bound, bound)
        return w, b

    params = {}
    params["img_fc_w"], params["img_fc_b"] = init_linear(ks[0], ks[1], fusion_dim, img_feature_dim)
    params["ext_fc_w"], params["ext_fc_b"] = init_linear(ks[2], ks[3], fusion_dim, ext_feature_dim)
    params["txt_fc_w"], params["txt_fc_b"] = init_linear(ks[4], ks[5], fusion_dim, txt_feature_dim)
    params["ext_txt_fc_w"], params["ext_txt_fc_b"] = init_linear(
        ks[6], ks[7], fusion_dim, ext_feature_dim + txt_feature_dim)
    params["classifier_w"], params["classifier_b"] = init_linear(
        ks[8], ks[9], num_classes, fusion_dim)

    img = jax.random.normal(ks[10], (B, img_feature_dim), jnp.float32)
    ext = jax.random.normal(ks[11], (B, 4, 4), jnp.float32)     # flattened to (B, 16)
    txt = jax.random.normal(ks[12], (B, txt_feature_dim), jnp.float32)

    out = custom_classifier_tvd(img, ext, txt, params)
    out = jax.block_until_ready(out)

    ref = _reference(img, ext, txt, params)
    assert out.shape == (B, num_classes)
    assert jnp.allclose(out, ref, atol=1e-4, rtol=1e-4)

    print("KERNEL_OK")
</pallas_src>

<mosaic_0001>
module attributes {stable_mosaic.version = 11 : i64} {
  func.func @_tvd_classifier_kernel(%arg0: memref<4x128xf32, #tpu.memory_space<vmem>>, %arg1: memref<128x128xf32, #tpu.memory_space<vmem>>, %arg2: memref<32x128xf32, #tpu.memory_space<vmem>>, %arg3: memref<1x128xf32, #tpu.memory_space<vmem>>, %arg4: memref<4x128xf32, #tpu.memory_space<vmem>>) attributes {dimension_semantics = [], scalar_prefetch = 0 : i64, scratch_operands = 0 : i64, tpu.core_type = #tpu.core_type<tc>} {
    %c0 = arith.constant 0 : index
    %c0_0 = arith.constant 0 : index
    %0 = vector.load %arg0[%c0, %c0_0] : memref<4x128xf32, #tpu.memory_space<vmem>>, vector<4x128xf32>
    %c0_1 = arith.constant 0 : index
    %c0_2 = arith.constant 0 : index
    %1 = vector.load %arg1[%c0_1, %c0_2] : memref<128x128xf32, #tpu.memory_space<vmem>>, vector<128x128xf32>
    %cst = arith.constant dense<0.000000e+00> : vector<4x128xf32>
    %2 = tpu.matmul %0, %1, %cst {dimension_numbers = #tpu.dot_dimension_numbers<[1], [0], [0], [1], [0, 0, 1, 1], [], []>} : vector<4x128xf32>, vector<128x128xf32>, vector<4x128xf32> -> vector<4x128xf32>
    %3 = vector.extract_strided_slice %2 {offsets = [0, 0], sizes = [4, 32], strides = [1, 1]} : vector<4x128xf32> to vector<4x32xf32>
    %4 = vector.extract_strided_slice %2 {offsets = [0, 32], sizes = [4, 32], strides = [1, 1]} : vector<4x128xf32> to vector<4x32xf32>
    %5 = vector.extract_strided_slice %2 {offsets = [0, 64], sizes = [4, 32], strides = [1, 1]} : vector<4x128xf32> to vector<4x32xf32>
    %6 = vector.extract_strided_slice %2 {offsets = [0, 96], sizes = [4, 32], strides = [1, 1]} : vector<4x128xf32> to vector<4x32xf32>
    %cst_3 = arith.constant dense<0xFF800000> : vector<4xf32>
    %7 = vector.multi_reduction <maximumf>, %3, %cst_3 [1] : vector<4x32xf32> to vector<4xf32>
    %8 = vector.shape_cast %7 : vector<4xf32> to vector<4x1xf32>
    %9 = vector.broadcast %8 : vector<4x1xf32> to vector<4x32xf32>
    %10 = arith.subf %3, %9 : vector<4x32xf32>
    %11 = math.exp %10 : vector<4x32xf32>
    %cst_4 = arith.constant dense<0.000000e+00> : vector<4xf32>
    %12 = vector.multi_reduction <add>, %11, %cst_4 [1] : vector<4x32xf32> to vector<4xf32>
    %13 = vector.shape_cast %12 : vector<4xf32> to vector<4x1xf32>
    %14 = tpu.reciprocal %13 : vector<4x1xf32> -> vector<4x1xf32>
    %15 = vector.broadcast %14 : vector<4x1xf32> to vector<4x32xf32>
    %16 = arith.mulf %11, %15 : vector<4x32xf32>
    %cst_5 = arith.constant dense<0xFF800000> : vector<4xf32>
    %17 = vector.multi_reduction <maximumf>, %4, %cst_5 [1] : vector<4x32xf32> to vector<4xf32>
    %18 = vector.shape_cast %17 : vector<4xf32> to vector<4x1xf32>
    %19 = vector.broadcast %18 : vector<4x1xf32> to vector<4x32xf32>
    %20 = arith.subf %4, %19 : vector<4x32xf32>
    %21 = math.exp %20 : vector<4x32xf32>
    %cst_6 = arith.constant dense<0.000000e+00> : vector<4xf32>
    %22 = vector.multi_reduction <add>, %21, %cst_6 [1] : vector<4x32xf32> to vector<4xf32>
    %23 = vector.shape_cast %22 : vector<4xf32> to vector<4x1xf32>
    %24 = tpu.reciprocal %23 : vector<4x1xf32> -> vector<4x1xf32>
    %25 = vector.broadcast %24 : vector<4x1xf32> to vector<4x32xf32>
    %26 = arith.mulf %21, %25 : vector<4x32xf32>
    %cst_7 = arith.constant dense<0xFF800000> : vector<4xf32>
    %27 = vector.multi_reduction <maximumf>, %5, %cst_7 [1] : vector<4x32xf32> to vector<4xf32>
    %28 = vector.shape_cast %27 : vector<4xf32> to vector<4x1xf32>
    %29 = vector.broadcast %28 : vector<4x1xf32> to vector<4x32xf32>
    %30 = arith.subf %5, %29 : vector<4x32xf32>
    %31 = math.exp %30 : vector<4x32xf32>
    %cst_8 = arith.constant dense<0.000000e+00> : vector<4xf32>
    %32 = vector.multi_reduction <add>, %31, %cst_8 [1] : vector<4x32xf32> to vector<4xf32>
    %33 = vector.shape_cast %32 : vector<4xf32> to vector<4x1xf32>
    %34 = tpu.reciprocal %33 : vector<4x1xf32> -> vector<4x1xf32>
    %35 = vector.broadcast %34 : vector<4x1xf32> to vector<4x32xf32>
    %36 = arith.mulf %31, %35 : vector<4x32xf32>
    %cst_9 = arith.constant dense<0xFF800000> : vector<4xf32>
    %37 = vector.multi_reduction <maximumf>, %6, %cst_9 [1] : vector<4x32xf32> to vector<4xf32>
    %38 = vector.shape_cast %37 : vector<4xf32> to vector<4x1xf32>
    %39 = vector.broadcast %38 : vector<4x1xf32> to vector<4x32xf32>
    %40 = arith.subf %6, %39 : vector<4x32xf32>
    %41 = math.exp %40 : vector<4x32xf32>
    %cst_10 = arith.constant dense<0.000000e+00> : vector<4xf32>
    %42 = vector.multi_reduction <add>, %41, %cst_10 [1] : vector<4x32xf32> to vector<4xf32>
    %43 = vector.shape_cast %42 : vector<4xf32> to vector<4x1xf32>
    %44 = tpu.reciprocal %43 : vector<4x1xf32> -> vector<4x1xf32>
    %45 = vector.broadcast %44 : vector<4x1xf32> to vector<4x32xf32>
    %46 = arith.mulf %41, %45 : vector<4x32xf32>
    %47 = arith.subf %16, %26 : vector<4x32xf32>
    %48 = math.absf %47 : vector<4x32xf32>
    %49 = vector.shape_cast %48 : vector<4x32xf32> to vector<1x4x32xf32>
    %cst_11 = arith.constant dense<0.000000e+00> : vector<1xf32>
    %50 = vector.multi_reduction <add>, %49, %cst_11 [1, 2] : vector<1x4x32xf32> to vector<1xf32>
    %51 = vector.shape_cast %50 : vector<1xf32> to vector<1x1x1xf32>
    %52 = vector.extract %51[0, 0, 0] : f32 from vector<1x1x1xf32>
    %53 = vector.broadcast %52 : f32 to vector<1x1xf32>
    %cst_12 = arith.constant 1.250000e-01 : f32
    %54 = vector.broadcast %cst_12 : f32 to vector<1x1xf32>
    %55 = arith.mulf %54, %53 : vector<1x1xf32>
    %56 = arith.subf %16, %36 : vector<4x32xf32>
    %57 = math.absf %56 : vector<4x32xf32>
    %58 = vector.shape_cast %57 : vector<4x32xf32> to vector<1x4x32xf32>
    %cst_13 = arith.constant dense<0.000000e+00> : vector<1xf32>
    %59 = vector.multi_reduction <add>, %58, %cst_13 [1, 2] : vector<1x4x32xf32> to vector<1xf32>
    %60 = vector.shape_cast %59 : vector<1xf32> to vector<1x1x1xf32>
    %61 = vector.extract %60[0, 0, 0] : f32 from vector<1x1x1xf32>
    %62 = vector.broadcast %61 : f32 to vector<1x1xf32>
    %cst_14 = arith.constant 1.250000e-01 : f32
    %63 = vector.broadcast %cst_14 : f32 to vector<1x1xf32>
    %64 = arith.mulf %63, %62 : vector<1x1xf32>
    %65 = arith.subf %16, %46 : vector<4x32xf32>
    %66 = math.absf %65 : vector<4x32xf32>
    %67 = vector.shape_cast %66 : vector<4x32xf32> to vector<1x4x32xf32>
    %cst_15 = arith.constant dense<0.000000e+00> : vector<1xf32>
    %68 = vector.multi_reduction <add>, %67, %cst_15 [1, 2] : vector<1x4x32xf32> to vector<1xf32>
    %69 = vector.shape_cast %68 : vector<1xf32> to vector<1x1x1xf32>
    %70 = vector.extract %69[0, 0, 0] : f32 from vector<1x1x1xf32>
    %71 = vector.broadcast %70 : f32 to vector<1x1xf32>
    %cst_16 = arith.constant 1.250000e-01 : f32
    %72 = vector.broadcast %cst_16 : f32 to vector<1x1xf32>
    %73 = arith.mulf %72, %71 : vector<1x1xf32>
    %74 = arith.addf %55, %64 : vector<1x1xf32>
    %75 = arith.addf %74, %73 : vector<1x1xf32>
    %76 = tpu.reciprocal %75 : vector<1x1xf32> -> vector<1x1xf32>
    %77 = arith.mulf %55, %76 : vector<1x1xf32>
    %78 = arith.mulf %64, %76 : vector<1x1xf32>
    %79 = arith.mulf %73, %76 : vector<1x1xf32>
    %80 = arith.addf %77, %78 : vector<1x1xf32>
    %81 = arith.addf %80, %79 : vector<1x1xf32>
    %cst_17 = arith.constant 1.000000e+00 : f32
    %82 = vector.broadcast %cst_17 : f32 to vector<1x1xf32>
    %83 = arith.subf %82, %81 : vector<1x1xf32>
    %84 = vector.broadcast %83 : vector<1x1xf32> to vector<4x32xf32>
    %85 = arith.mulf %3, %84 : vector<4x32xf32>
    %86 = vector.broadcast %77 : vector<1x1xf32> to vector<4x32xf32>
    %87 = arith.mulf %4, %86 : vector<4x32xf32>
    %88 = arith.addf %85, %87 : vector<4x32xf32>
    %89 = vector.broadcast %78 : vector<1x1xf32> to vector<4x32xf32>
    %90 = arith.mulf %5, %89 : vector<4x32xf32>
    %91 = arith.addf %88, %90 : vector<4x32xf32>
    %92 = vector.broadcast %79 : vector<1x1xf32> to vector<4x32xf32>
    %93 = arith.mulf %6, %92 : vector<4x32xf32>
    %94 = arith.addf %91, %93 : vector<4x32xf32>
    %c0_18 = arith.constant 0 : index
    %c0_19 = arith.constant 0 : index
    %95 = vector.load %arg2[%c0_18, %c0_19] : memref<32x128xf32, #tpu.memory_space<vmem>>, vector<32x128xf32>
    %cst_20 = arith.constant dense<0.000000e+00> : vector<4x128xf32>
    %96 = tpu.matmul %94, %95, %cst_20 {dimension_numbers = #tpu.dot_dimension_numbers<[1], [0], [0], [1], [0, 0, 1, 1], [], []>} : vector<4x32xf32>, vector<32x128xf32>, vector<4x128xf32> -> vector<4x128xf32>
    %c0_21 = arith.constant 0 : index
    %c0_22 = arith.constant 0 : index
    %97 = vector.load %arg3[%c0_21, %c0_22] : memref<1x128xf32, #tpu.memory_space<vmem>>, vector<1x128xf32>
    %98 = vector.broadcast %97 : vector<1x128xf32> to vector<4x128xf32>
    %99 = arith.addf %96, %98 : vector<4x128xf32>
    %c0_23 = arith.constant 0 : index
    %c0_24 = arith.constant 0 : index
    %100 = vector.load %arg4[%c0_23, %c0_24] : memref<4x128xf32, #tpu.memory_space<vmem>>, vector<4x128xf32>
    tpu.vector_store %arg4[%c0_23, %c0_24], %99 {strides = array<i32>} : memref<4x128xf32, #tpu.memory_space<vmem>>, vector<4x128xf32>,
    return
  }
}

</mosaic_0001>

<bundles_post_ra>
// kernel: tpu_custom_call.1
= control target key start
LH: loop header
LB: loop body
LE: loop exit
PB: predicated region body
PF: predicated region fallthrough
CT: control target
= control target key end

     0   :  { %9 = vsyncpa [#allocation3], 0  ;;  %s753_s0 = inlined_call_operand.hbm [shape: f32[4,128], index: 0, kind: input, shape index: {}]   ;;  %s754_s1 = inlined_call_operand.hbm [shape: f32[128,128], index: 1, kind: input, shape index: {}]   ;;  %s755_s2 = inlined_call_operand.hbm [shape: f32[32,128], index: 2, kind: input, shape index: {}]   ;;  %s756_s3 = inlined_call_operand.vmem [shape: f32[1,128], index: 3, kind: input, shape index: {}]   ;;  %s757_s4 = inlined_call_operand.hbm [shape: f32[4,128], index: 4, kind: output, shape index: {}]  }
   0x1   :  { %10 = vsyncpa [#allocation6], 0 }
   0x2   :  { %11 = vsyncpa [#allocation4], 0  ;;  %s618_s15 = smov [#allocation5]   ;;  %s524_s19 = scalar_lea.hbm %s754_s1, 2048 }
   0x3   :  { %s27_s16 = sshll.u32 %s618_s15, 4  ;;  %p525_p0 = scmp.ne.s32.totalorder %s754_s1, %s524_s19  ;;  %s28_s16 = int_to_ptr.vmem [resolvable:$true] %s27_s16 }
   0x4   :  { %p528_p1 = scmp.lt.u32.totalorder %s524_s19, %s754_s1 }
   0x6   :  { %p530_p2 = pnand %p528_p1, %p525_p0 }
   0x8   :  { %533 = shalt.err (!%p530_p2)
}
   0x9   :  { %s534_s24 = scalar_lea.vmem %s28_s16, 2048  ;;  %p539_p4 = scmp.lt.s32.totalorder %s28_s16, %s28_s16 }
   0xa   :  { %p535_p3 = scmp.ne.s32.totalorder %s28_s16, %s534_s24  ;;  %p540_p5 = scmp.lt.s32.totalorder %s534_s24, %s534_s24 }
   0xc   :  { %p541_p6 = por %p540_p5, %p539_p4 }
   0xe   :  { %p542_p7 = pnand %p541_p6, %p535_p3 }
  0x10   :  { %545 = shalt.err (!%p542_p7)
}
  0x11   :  { %s619_s25 = smov 128   ;;  %s620_s26 = smov 8  }
  0x12   :  { %33 = dma.hbm_to_vmem [thread:$0]  %s754_s1, 2048, %s28_s16, [#allocation6], %s619_s25, %s619_s25, %s620_s26  }
  0x13   :  { %s621_s29 = smov [#allocation2]   ;;  %s622_s5 = smov [#allocation7]  }
  0x14   :  { %s18_s30 = sshll.u32 %s621_s29, 4  ;;  %s39_s6 = sshll.u32 %s622_s5, 4  ;;  %s19_s30 = int_to_ptr.vmem [resolvable:$true] %s18_s30  ;;  %s40_s6 = int_to_ptr.vmem [resolvable:$true] %s39_s6 }
  0x15   :  { %s546_s9 = scalar_lea.hbm %s753_s0, 64 }
  0x16   :  { %p547_p8 = scmp.ne.s32.totalorder %s753_s0, %s546_s9  ;;  %p550_p9 = scmp.lt.u32.totalorder %s546_s9, %s753_s0 }
  0x18   :  { %p552_p10 = pnand %p550_p9, %p547_p8 }
  0x1a   :  { %555 = shalt.err (!%p552_p10)
}
  0x1b   :  { %s556_s1 = scalar_lea.vmem %s19_s30, 64  ;;  %p561_p12 = scmp.lt.s32.totalorder %s19_s30, %s19_s30 }
  0x1c   :  { %p557_p11 = scmp.ne.s32.totalorder %s19_s30, %s556_s1  ;;  %p562_p13 = scmp.lt.s32.totalorder %s556_s1, %s556_s1 }
  0x1e   :  { %p563_p0 = por %p562_p13, %p561_p12 }
  0x20   :  { %p564_p1 = pnand %p563_p0, %p557_p11 }
  0x22   :  { %567 = shalt.err (!%p564_p1)
}
  0x23   :  { %21 = dma.hbm_to_vmem [thread:$0]  %s753_s0, 64, %s19_s30, [#allocation3]  }
  0x24   :  { %s568_s18 = scalar_lea.hbm %s755_s2, 512 }
  0x25   :  { %p569_p2 = scmp.ne.s32.totalorder %s755_s2, %s568_s18  ;;  %p572_p3 = scmp.lt.u32.totalorder %s568_s18, %s755_s2 }
  0x27   :  { %p574_p4 = pnand %p572_p3, %p569_p2 }
  0x29   :  { %577 = shalt.err (!%p574_p4)
}
  0x2a   :  { %s578_s23 = scalar_lea.vmem %s40_s6, 512  ;;  %p583_p6 = scmp.lt.s32.totalorder %s40_s6, %s40_s6 }
  0x2b   :  { %p579_p5 = scmp.ne.s32.totalorder %s40_s6, %s578_s23  ;;  %p584_p7 = scmp.lt.s32.totalorder %s578_s23, %s578_s23 }
  0x2d   :  { %p585_p8 = por %p584_p7, %p583_p6 }
  0x2f   :  { %p586_p9 = pnand %p585_p8, %p579_p5 }
  0x31   :  { %589 = shalt.err (!%p586_p9)
}
  0x32   :  { %45 = dma.hbm_to_vmem [thread:$0]  %s755_s2, 512, %s40_s6, [#allocation6], %s619_s25, %s619_s25, %s620_s26  }
  0x33   :  { %612 = dma.done.wait [#allocation3], 64  }
  0x34   :  { %613 = vsyncadd [#allocation3], 4294967232 }
  0x35   :  { %614 = dma.done.wait [#allocation6], 2560  }
  0x36   :  { %615 = vsyncadd [#allocation6], 4294964736  ;;  %v623_v0 = vmov 0.0|0.0   ;;  %vm624_vm0 = vmmov 0   ;;  %v625_v1 = vmov 0.0   ;;  %v58_v2 = vld [vmem:[#allocation5] sm:$0xff] }
  0x37   :  { %458 = vmatprep.subr.bf16.mxu0 %v623_v0  ;;  %444 = vmatprep.mubr.msk.f32.mxu0 %vm624_vm0, %v625_v1  ;;  %v59_v3 = vld [vmem:[#allocation5 + $0x8] sm:$0xff]  ;;  %v60_v4 = vld [vmem:[#allocation5 + $0x10] sm:$0xff]  ;;  %v61_v6 = vld [vmem:[#allocation5 + $0x18] sm:$0xff]  ;;  %vm188_vm1 = vcmask 1044224   ;;  %vm156_vm2 = vcmask 519424   ;;  %vm172_vm3 = vcmask 781824  }
  0x38   :  { %482 = vmatprep.subr.bf16.mxu1 %v623_v0  ;;  %455 = vmatprep.mubr.msk.f32.mxu1 %vm624_vm0, %v625_v1  ;;  %v459_v5 = vpack.c.bf16 %v59_v3, %v58_v2  ;;  %v462_v7 = vpack.c.bf16 %v61_v6, %v60_v4  ;;  %v62_v8 = vld [vmem:[#allocation5 + $0x20] sm:$0xff]  ;;  %v63_v9 = vld [vmem:[#allocation5 + $0x28] sm:$0xff]  ;;  %v64_v11 = vld [vmem:[#allocation5 + $0x30] sm:$0xff]  ;;  %s626_s2 = smov 96   ;;  %s627_s25 = smov 64   ;;  %vm144_vm4 = vcmask 257024  }
  0x39   :  { %v465_v10 = vpack.c.bf16 %v63_v9, %v62_v8  ;;  %v65_v12 = vld [vmem:[#allocation5 + $0x38] sm:$0xff]  ;;  %v66_v14 = vld [vmem:[#allocation5 + $0x40] sm:$0xff]  ;;  %v67_v15 = vld [vmem:[#allocation5 + $0x48] sm:$0xff]  ;;  %s628_s26 = smov 32   ;;  %vm297_vm5 = vcmask 261120   ;;  %s629_s6 = smov [#allocation8]  }
  0x3a   :  { %460 = vmatpush3.bf16.msra.mxu0 %v459_v5  ;;  %v468_v13 = vpack.c.bf16 %v65_v12, %v64_v11  ;;  %v471_v16 = vpack.c.bf16 %v67_v15, %v66_v14  ;;  %v68_v17 = vld [vmem:[#allocation5 + $0x50] sm:$0xff]  ;;  %v69_v18 = vld [vmem:[#allocation5 + $0x58] sm:$0xff]  ;;  %v70_v20 = vld [vmem:[#allocation5 + $0x60] sm:$0xff]  ;;  %s378_s7 = sshll.u32 %s629_s6, 4  ;;  %s379_s7 = int_to_ptr.vmem [resolvable:$true] %s378_s7 }
  0x3b   :  { %461 = vmatprep.subr.bf16.mxu0 %v623_v0  ;;  %v474_v19 = vpack.c.bf16 %v69_v18, %v68_v17  ;;  %v71_v21 = vld [vmem:[#allocation5 + $0x68] sm:$0xff]  ;;  %v72_v23 = vld [vmem:[#allocation5 + $0x70] sm:$0xff]  ;;  %v73_v24 = vld [vmem:[#allocation5 + $0x78] sm:$0xff]  ;;  %s590_s8 = scalar_lea.vmem %s379_s7, 64  ;;  %p595_p11 = scmp.lt.s32.totalorder %s379_s7, %s379_s7 }
  0x3c   :  { %v477_v22 = vpack.c.bf16 %v71_v21, %v70_v20  ;;  %v480_v25 = vpack.c.bf16 %v73_v24, %v72_v23  ;;  %v57_v26 = vld [vmem:[#allocation2] sm:$0xf]  ;;  %v286_v17 = vld [vmem:[#allocation7] sm:$0xff]  ;;  %v287_v18 = vld [vmem:[#allocation7 + $0x8] sm:$0xff]  ;;  %p591_p10 = scmp.ne.s32.totalorder %s379_s7, %s590_s8  ;;  %p596_p12 = scmp.lt.s32.totalorder %s590_s8, %s590_s8 }
  0x3e   :  { %463 = vmatpush3.bf16.msra.mxu0 %v462_v7  ;;  %p597_p13 = por %p596_p12, %p595_p11 }
  0x3f   :  { %464 = vmatprep.subr.bf16.mxu0 %v623_v0 }
  0x40   :  { %p598_p0 = pnand %p597_p13, %p591_p10 }
  0x42   :  { %466 = vmatpush3.bf16.msra.mxu0 %v465_v10 }
  0x43   :  { %467 = vmatprep.subr.bf16.mxu0 %v623_v0 }
  0x46   :  { %469 = vmatpush3.bf16.msra.mxu0 %v468_v13 }
  0x47   :  { %470 = vmatprep.subr.bf16.mxu0 %v623_v0 }
  0x4a   :  { %472 = vmatpush3.bf16.msra.mxu0 %v471_v16 }
  0x4b   :  { %473 = vmatprep.subr.bf16.mxu0 %v623_v0 }
  0x4e   :  { %475 = vmatpush3.bf16.msra.mxu0 %v474_v19  ;;  %v483_v19 = vpack.c.bf16 %v287_v18, %v286_v17 }
  0x4f   :  { %476 = vmatprep.subr.bf16.mxu0 %v623_v0 }
  0x50   :  { %484 = vmatpush3.bf16.msra.mxu1 %v483_v19 }
  0x51   :  { %485 = vmatprep.subr.bf16.mxu1 %v623_v0 }
  0x52   :  { %478 = vmatpush3.bf16.msra.mxu0 %v477_v22 }
  0x53   :  { %479 = vmatprep.subr.bf16.mxu0 %v623_v0 }
  0x56   :  { %481 = vmatpush3.bf16.msra.mxu0 %v480_v25 }
  0x59   :  { %445 = vmatmul.mubr.f32.vlgmr.msra.gmra.mrb[0].mxu0 %v57_v26 }
 0x12c   :  { %v706_v27 = vpop.f32.mrb[0].mxu0 }
 0x12d   :  { %v446_v28 = vpop.f32.mrb[1].mxu0  ;;  %v189_v29 = vsel %vm188_vm1, %v706_v27, -inf  ;;  %v157_v30 = vsel %vm156_vm2, %v706_v27, -inf  ;;  %v173_v31 = vsel %vm172_vm3, %v706_v27, -inf  ;;  %v145_v44 = vsel %vm144_vm4, %v706_v27, -inf }
 0x12e   :  { %190 = vmax.xlane.f32.xlu1 %v189_v29  ;;  %158 = vmax.xlane.f32.xlu0 %v157_v30 }
 0x132   :  { %174 = vmax.xlane.f32.xlu0 %v173_v31 }
 0x1bb   :  { %v191_v32 = vpop.xlane.xlu1 %190  ;;  %v159_v33 = vpop.xlane.xlu0 %158 }
 0x1bc   :  { %v160_v34 = vsub.f32 %v706_v27, %v159_v33  ;;  %v192_v35 = vsub.f32 %v706_v27, %v191_v32 }
 0x1be   :  { %v161_v36 = vmul.f32 1.442695, %v160_v34  ;;  %v193_v39 = vmul.f32 1.442695, %v192_v35 }
 0x1bf   :  { %v175_v37 = vpop.xlane.xlu0 %174 }
 0x1c0   :  { %v176_v38 = vsub.f32 %v706_v27, %v175_v37  ;;  %506 = vpow2.f32 %v161_v36 }
 0x1c2   :  { %v177_v40 = vmul.f32 1.442695, %v176_v38 }
 0x1c4   :  { %508 = vpow2.f32 %v177_v40 }
 0x1c5   :  { %510 = vpow2.f32 %v193_v39 }
 0x1ca   :  { %v507_v41 = vpop.eup %506 }
 0x1cb   :  { %164 = vrot.lane.b32.xlu1 %v507_v41, %s626_s2 }
 0x1ce   :  { %v509_v42 = vpop.eup %508 }
 0x1cf   :  { %v511_v43 = vpop.eup %510  ;;  %180 = vrot.lane.b32.xlu0 %v509_v42, %s627_s25 }
 0x1d0   :  { %196 = vrot.lane.b32.xlu1 %v511_v43, %s628_s26 }
 0x1f4   :  { %146 = vmax.xlane.f32.xlu1 %v145_v44 }
 0x23d   :  { %v165_v45 = vpop.permute.xlu1 %164 }
 0x23e   :  { %v167_v46 = vsel %vm144_vm4, %v165_v45, 0.0 }
 0x23f   :  { %168 = vadd.xlane.f32.xlu0 %v167_v46 }
 0x241   :  { %v181_v47 = vpop.permute.xlu0 %180 }
 0x242   :  { %v197_v48 = vpop.permute.xlu1 %196  ;;  %v183_v49 = vsel %vm144_vm4, %v181_v47, 0.0 }
 0x243   :  { %v199_v50 = vsel %vm144_vm4, %v197_v48, 0.0  ;;  %184 = vadd.xlane.f32.xlu0 %v183_v49  ;;  %v288_v49 = vld [vmem:[#allocation7 + $0x10] sm:$0xff] }
 0x244   :  { %200 = vadd.xlane.f32.xlu1 %v199_v50  ;;  %v289_v50 = vld [vmem:[#allocation7 + $0x18] sm:$0xff] }
 0x281   :  { %v147_v51 = vpop.xlane.xlu1 %146 }
 0x282   :  { %v148_v52 = vsub.f32 %v706_v27, %v147_v51  ;;  %v486_v51 = vpack.c.bf16 %v289_v50, %v288_v49 }
 0x284   :  { %v149_v53 = vmul.f32 1.442695, %v148_v52  ;;  %487 = vmatpush3.bf16.msra.mxu1 %v486_v51 }
 0x286   :  { %512 = vpow2.f32 %v149_v53 }
 0x290   :  { %v513_v54 = vpop.eup %512 }
 0x291   :  { %v151_v55 = vsel %vm144_vm4, %v513_v54, 0.0 }
 0x292   :  { %152 = vadd.xlane.f32.xlu0 %v151_v55 }
 0x2cc   :  { %v169_v56 = vpop.xlane.xlu0 %168 }
 0x2cd   :  { %514 = vrcp.f32 %v169_v56 }
 0x2d0   :  { %v185_v57 = vpop.xlane.xlu0 %184 }
 0x2d1   :  { %v201_v58 = vpop.xlane.xlu1 %200  ;;  %516 = vrcp.f32 %v185_v57 }
 0x2d2   :  { %518 = vrcp.f32 %v201_v58 }
 0x2d7   :  { %v515_v59 = vpop.eup %514 }
 0x2d8   :  { %v171_v60 = vmul.f32 %v515_v59, %v507_v41 }
 0x2da   :  { %205 = vrot.lane.b32.xlu1 %v171_v60, %s626_s2 }
 0x2db   :  { %v517_v61 = vpop.eup %516 }
 0x2dc   :  { %v519_v62 = vpop.eup %518  ;;  %v187_v63 = vmul.f32 %v517_v61, %v509_v42 }
 0x2dd   :  { %v203_v1 = vmul.f32 %v519_v62, %v511_v43 }
 0x2de   :  { %223 = vrot.lane.b32.xlu0 %v187_v63, %s627_s25 }
 0x2df   :  { %241 = vrot.lane.b32.xlu1 %v203_v1, %s628_s26 }
 0x31f   :  { %v153_v2 = vpop.xlane.xlu0 %152 }
 0x320   :  { %520 = vrcp.f32 %v153_v2 }
 0x32a   :  { %v521_v3 = vpop.eup %520 }
 0x32b   :  { %v155_v4 = vmul.f32 %v521_v3, %v513_v54 }
 0x34c   :  { %v206_v5 = vpop.permute.xlu1 %205 }
 0x34d   :  { %v208_v6 = vsub.f32 %v155_v4, %v206_v5 }
 0x34f   :  { %v209_v7 = vand.u32 2147483647, %v208_v6  ;;  %v388_v6 = vld [vmem:[%s756_s3] ss:$0 sm:$0xff] }
 0x350   :  { %v224_v8 = vpop.permute.xlu0 %223 }
 0x351   :  { %v226_v9 = vsub.f32 %v155_v4, %v224_v8  ;;  %v242_v10 = vpop.permute.xlu1 %241  ;;  %v210_v11 = vsel %vm144_vm4, %v209_v7, 0.0 }
 0x352   :  { %v244_v12 = vsub.f32 %v155_v4, %v242_v10  ;;  %211 = vadd.xlane.f32.xlu1 %v210_v11 }
 0x353   :  { %v227_v13 = vand.u32 2147483647, %v226_v9 }
 0x354   :  { %v245_v14 = vand.u32 2147483647, %v244_v12 }
 0x355   :  { %v228_v15 = vsel %vm144_vm4, %v227_v13, 0.0 }
 0x356   :  { %229 = vadd.xlane.f32.xlu0 %v228_v15  ;;  %v246_v16 = vsel %vm144_vm4, %v245_v14, 0.0 }
 0x35a   :  { %247 = vadd.xlane.f32.xlu0 %v246_v16 }
 0x3df   :  { %v212_v20 = vpop.xlane.xlu1 %211 }
 0x3e0   :  { %v213_v21 = vrot.slane %v212_v20, 4 }
 0x3e2   :  { %v214_v22 = vadd.f32 %v213_v21, %v212_v20 }
 0x3e3   :  { %v230_v23 = vpop.xlane.xlu0 %229 }
 0x3e4   :  { %v215_v24 = vrot.slane %v214_v22, 2  ;;  %v231_v25 = vrot.slane %v230_v23, 4 }
 0x3e6   :  { %v232_v26 = vadd.f32 %v231_v25, %v230_v23  ;;  %v216_v28 = vadd.f32 %v215_v24, %v214_v22 }
 0x3e7   :  { %v248_v29 = vpop.xlane.xlu0 %247 }
 0x3e8   :  { %v233_v30 = vrot.slane %v232_v26, 2  ;;  %v249_v31 = vrot.slane %v248_v29, 4  ;;  %v217_v32 = vrot.slane %v216_v28, 1 }
 0x3ea   :  { %v250_v33 = vadd.f32 %v249_v31, %v248_v29  ;;  %v218_v34 = vadd.f32 %v217_v32, %v216_v28  ;;  %v234_v35 = vadd.f32 %v233_v30, %v232_v26 }
 0x3ec   :  { %v251_v36 = vrot.slane %v250_v33, 2  ;;  %488 = vpush %v218_v34  ;;  %v235_v37 = vrot.slane %v234_v35, 1 }
 0x3ee   :  { %v236_v38 = vadd.f32 %v235_v37, %v234_v35  ;;  %v252_v0 = vadd.f32 %v251_v36, %v250_v33 }
 0x3f0   :  { %490 = vpush %v236_v38  ;;  %v253_v39 = vrot.slane %v252_v0, 1 }
 0x3f2   :  { %v254_v40 = vadd.f32 %v253_v39, %v252_v0 }
 0x3f4   :  { %492 = vpush %v254_v40 }
 0x41d   :  { %s489_s27 = spop %488 }
 0x41e   :  { %v220_v41 = vstv %s489_s27 }
 0x41f   :  { %v221_v44 = vmul.f32 0.125, %v220_v41 }
 0x421   :  { %s491_s28 = spop %490 }
 0x422   :  { %v238_v42 = vstv %s491_s28 }
 0x423   :  { %v239_v43 = vmul.f32 0.125, %v238_v42 }
 0x425   :  { %s493_s29 = spop %492  ;;  %v258_v46 = vadd.f32 %v239_v43, %v221_v44 }
 0x426   :  { %v256_v45 = vstv %s493_s29 }
 0x427   :  { %v257_v47 = vmul.f32 0.125, %v256_v45 }
 0x429   :  { %v259_v48 = vadd.f32 %v258_v46, %v257_v47 }
 0x42b   :  { %522 = vrcp.f32 %v259_v48 }
 0x435   :  { %v523_v52 = vpop.eup %522 }
 0x436   :  { %v261_v53 = vmul.f32 %v523_v52, %v221_v44  ;;  %v262_v54 = vmul.f32 %v523_v52, %v239_v43  ;;  %v263_v55 = vmul.f32 %v523_v52, %v257_v47 }
 0x438   :  { %v264_v56 = vadd.f32 %v262_v54, %v261_v53  ;;  %v274_v57 = vmul.f32 %v262_v54, %v706_v27  ;;  %v268_v58 = vmul.f32 %v261_v53, %v706_v27  ;;  %v280_v60 = vmul.f32 %v263_v55, %v706_v27 }
 0x43a   :  { %v265_v59 = vadd.f32 %v264_v56, %v263_v55  ;;  %276 = vrot.lane.b32.xlu0 %v274_v57, %s627_s25  ;;  %270 = vrot.lane.b32.xlu1 %v268_v58, %s626_s2 }
 0x43c   :  { %v266_v61 = vsub.f32 1.0, %v265_v59 }
 0x43e   :  { %282 = vrot.lane.b32.xlu1 %v280_v60, %s628_s26  ;;  %v267_v62 = vmul.f32 %v266_v61, %v706_v27 }
 0x4ac   :  { %v271_v63 = vpop.permute.xlu1 %270  ;;  %v277_v2 = vpop.permute.xlu0 %276 }
 0x4ad   :  { %v273_v1 = vadd.f32 %v271_v63, %v267_v62 }
 0x4af   :  { %v279_v3 = vadd.f32 %v277_v2, %v273_v1 }
 0x4b0   :  { %v283_v4 = vpop.permute.xlu1 %282 }
 0x4b1   :  { %v285_v5 = vadd.f32 %v283_v4, %v279_v3 }
 0x4b3   :  { %456 = vmatmul.mubr.msk.f32.vlgmr.msra.gmra.mrb[0].mxu1 %vm297_vm5, %v285_v5 }
 0x586   :  { %v367_v7 = vpop.f32.mrb[0].mxu1 }
 0x587   :  { %v368_v8 = vadd.f32 %v388_v6, %v367_v7  ;;  %v457_v9 = vpop.f32.mrb[1].mxu1 }
 0x589   :  { %371 = vst [vmem:[#allocation8] sm:$0xf] %v368_v8 }
 0x58a   :  { %601 = shalt.err (!%p598_p0)
}
 0x58b   :  { %s602_s11 = scalar_lea.hbm %s757_s4, 64 }
 0x58c   :  { %p603_p1 = scmp.ne.s32.totalorder %s757_s4, %s602_s11  ;;  %p606_p2 = scmp.lt.u32.totalorder %s602_s11, %s757_s4 }
 0x58e   :  { %p608_p3 = pnand %p606_p2, %p603_p1 }
 0x590   :  { %611 = shalt.err (!%p608_p3)
}
 0x591   :  { %381 = dma.vmem_to_hbm [thread:$0]  %s379_s7, 64, %s757_s4, [#allocation4]  }
 0x592   :  { %616 = dma.done.wait [#allocation4], 64  }
 0x593   :  { %617 = vsyncadd [#allocation4], 4294967232 }
 0x594   :  { %385 = vsyncpa [#allocation3], 1 }
 0x595   :  { %386 = vsyncpa [#allocation6], 1 }
 0x596   :  { %387 = vsyncpa [#allocation4], 1 }

</bundles_post_ra>
